<compile_context>
chip_gen: v5e
topology: v5e:2x2
jax: 0.10.0
libtpu: 0.0.40
codegen_flags: <defaults>
</compile_context>

<pallas_src>
import jax
import jax.numpy as jnp
from jax import lax
from jax.experimental import pallas as pl
from jax.experimental.pallas import tpu as pltpu

EPS = 1e-5  # PyTorch BatchNorm2d default eps


def _bn_relu_pool_conv1x1_kernel(x_ref, scale_ref, bias_ref, w_ref, o_ref):
    """Fused BN + ReLU + AvgPool(2,2) + 1x1 conv for one block of pooled rows.

    x_ref:     (2*TR, Wout, 2*C)  raw input rows (H-pairs in dim 0, W folded in lanes)
    scale_ref: (1, 2*C)           folded BN scale, tiled over the W-pair
    bias_ref:  (1, 2*C)           folded BN bias,  tiled over the W-pair
    w_ref:     (C, C_out)         1x1 conv weight (0.25 pool factor pre-folded)
    o_ref:     (TR*Wout, C_out)   pooled + convolved output rows
    """
    two_tr, wout, c2 = x_ref.shape
    c = c2 // 2
    tr = two_tr // 2

    # BN + ReLU in f32 on the VPU (works for f32 or bf16 inputs).
    h = jnp.maximum(x_ref[...].astype(jnp.float32) * scale_ref[...]
                    + bias_ref[...], 0.0)                     # (2TR, Wout, 2C)

    # Pool the W pair: the two lane halves.
    hw = h[:, :, :c] + h[:, :, c:]                            # (2TR, Wout, C)

    # Pool the H pair: split the leading dim (free) and add.
    # 0.25 normalization is folded into w_ref by the wrapper.
    hw = hw.reshape(tr, 2, wout, c)
    p = hw[:, 0] + hw[:, 1]                                   # (TR, Wout, C)

    # 1x1 conv == matmul over channels; low-precision operands, f32 accumulate.
    # Note: merging (TR, Wout) is free when Wout % 8 == 0 (sublane aligned).
    p2 = p.reshape(tr * wout, c).astype(w_ref.dtype)
    o_ref[...] = jnp.dot(p2, w_ref[...],
                         preferred_element_type=jnp.float32).astype(o_ref.dtype)


def _vmem_limit_bytes():
    """~3/4 of physical VMEM: 96 MiB on v5e/v6e (128 MiB), 48 MiB on v7x (64 MiB).
    Falls back to the conservative v7x value if the query is unavailable."""
    phys = 64 * 1024 * 1024
    try:  # trace-time hardware query
        phys = int(pltpu.get_tpu_info().vmem_capacity_bytes)
    except Exception:
        pass
    return max(16 << 20, min((phys * 3) // 4, 96 << 20))


def _pick_tile_rows(rows, wout, c, c_out, in_bytes, out_bytes, mxu_bytes, budget):
    """Largest legal tile of pooled output rows whose per-step VMEM footprint
    fits `budget`, preferring >= 2 roughly balanced grid steps (so both v7x
    TensorCores get work via dimension_semantics=('parallel',))."""

    def footprint(t):
        x_blk = 2 * (2 * t) * wout * (2 * c) * in_bytes       # double-buffered input block
        temps = (4 + 2 + 1) * t * wout * c * 4                 # h / hw / p f32 temporaries
        p_mxu = t * wout * c * mxu_bytes                       # cast matmul operand
        o_blk = 2 * t * wout * c_out * out_bytes               # double-buffered output block
        return x_blk + temps + p_mxu + o_blk

    # Legality: output block (t*wout, c_out) needs t*wout % 8 == 0 (sublane)
    # unless it is the full output.
    legal = [t for t in range(1, rows + 1) if (t * wout) % 8 == 0 or t == rows]
    fitting = [t for t in legal if footprint(t) <= budget]
    half = -(-rows // 2)  # ceil(rows / 2): largest tile that still gives 2 steps
    for cand in ([t for t in fitting if t <= half],
                 [t for t in fitting if t < rows],
                 fitting):
        if cand:
            return max(cand)
    # Nothing fits the budget: smallest legal tile (may still exceed the VMEM
    # limit for extreme Wout*C; caller would then need a larger vmem_limit).
    return min(legal)


def transition_forward(x, params, *, data_format="NCHW", tile_rows=None,
                       out_dtype=None, mxu_dtype=jnp.bfloat16):
    """Pallas implementation of Transition.forward.

    data_format="NCHW" (default, matches PyTorch) transposes to channels-last
    around the kernel; data_format="NHWC" is the zero-transpose fast path.
    """
    g, b, m, v, w = params
    c_out = int(w.shape[0])

    if data_format == "NCHW":
        N, C, H, W = x.shape
        # TODO(synk): keep the surrounding model channels-last to avoid this
        # full HBM round trip (use data_format="NHWC").
        x_nhwc = jnp.transpose(x, (0, 2, 3, 1))
    elif data_format == "NHWC":
        N, H, W, C = x.shape
        x_nhwc = x
    else:
        raise ValueError(f"unsupported data_format: {data_format!r}")

    Hout, Wout = H // 2, W // 2
    M = N * Hout * Wout
    rows = N * Hout
    if out_dtype is None:
        out_dtype = x.dtype

    if H != 2 * Hout or W != 2 * Wout:          # AvgPool2d(2,2) drops the odd edge
        x_nhwc = x_nhwc[:, :2 * Hout, :2 * Wout, :]

    # Metadata-only reshape: (N, 2*Hout, 2*Wout, C) -> (N*2*Hout, Wout, 2*C).
    x_r = x_nhwc.reshape(N * 2 * Hout, Wout, 2 * C)

    # Fold BN running stats into a per-channel scale/bias, tiled over the
    # W-pair that now lives in the lane dim.
    inv = lax.rsqrt(v.astype(jnp.float32) + EPS)
    scale = g.astype(jnp.float32) * inv
    bias = b.astype(jnp.float32) - m.astype(jnp.float32) * scale
    scale2 = jnp.tile(scale, 2).reshape(1, 2 * C)
    bias2 = jnp.tile(bias, 2).reshape(1, 2 * C)

    # (C_out, C, 1, 1) -> (C, C_out); fold the AvgPool 0.25 in f32, then cast.
    w_mat = (0.25 * jnp.transpose(w.reshape(c_out, C).astype(jnp.float32),
                                  (1, 0))).astype(mxu_dtype)

    # --- tiling / VMEM budget ---------------------------------------------
    vmem_limit = _vmem_limit_bytes()
    in_bytes = x_r.dtype.itemsize
    out_bytes = jnp.dtype(out_dtype).itemsize
    mxu_bytes = jnp.dtype(mxu_dtype).itemsize
    fixed = 2 * C * c_out * mxu_bytes + 2 * 2 * (2 * C) * 4    # weights + scale/bias buffers
    budget = vmem_limit - fixed - (4 << 20)                    # slack for pipeline bookkeeping
    if tile_rows is None:
        tile_rows = _pick_tile_rows(rows, Wout, C, c_out,
                                    in_bytes, out_bytes, mxu_bytes, budget)
    tr = int(tile_rows)
    grid = (pl.cdiv(rows, tr),)

    cost = pl.CostEstimate(
        flops=2 * M * C * c_out,
        transcendentals=0,
        bytes_accessed=(x_r.size * in_bytes + M * c_out * out_bytes
                        + C * c_out * mxu_bytes + 4 * C * 4),
    )

    out2d = pl.pallas_call(
        _bn_relu_pool_conv1x1_kernel,
        out_shape=jax.ShapeDtypeStruct((M, c_out), out_dtype),
        grid=grid,
        in_specs=[
            pl.BlockSpec((2 * tr, Wout, 2 * C), lambda i: (i, 0, 0)),
            pl.BlockSpec((1, 2 * C), lambda i: (0, 0)),        # grid-invariant
            pl.BlockSpec((1, 2 * C), lambda i: (0, 0)),        # grid-invariant
            pl.BlockSpec((C, c_out), lambda i: (0, 0)),        # grid-invariant
        ],
        out_specs=pl.BlockSpec((tr * Wout, c_out), lambda i: (i, 0)),
        compiler_params=pltpu.CompilerParams(
            dimension_semantics=("parallel",),
            vmem_limit_bytes=int(vmem_limit)),
        cost_estimate=cost,
    )(x_r, scale2, bias2, w_mat)

    out = out2d.reshape(N, Hout, Wout, c_out)
    if data_format == "NCHW":
        out = jnp.transpose(out, (0, 3, 1, 2))   # back to NCHW (PyTorch layout)
    return out


def ref_forward(x, params):
    """Pure-JAX reference (mirrors PyTorch eval-mode semantics, NCHW)."""
    g, b, m, v, w = params
    h = (x - m[None, :, None, None]) / jnp.sqrt(v[None, :, None, None] + EPS)
    h = h * g[None, :, None, None] + b[None, :, None, None]
    h = jnp.maximum(h, 0.0)
    h = lax.conv_general_dilated(h, w, (1, 1), 'VALID',
                                 dimension_numbers=('NCHW', 'OIHW', 'NCHW'))
    N, K, H, W = h.shape
    h = h[:, :, :H // 2 * 2, :W // 2 * 2]
    h = h.reshape(N, K, H // 2, 2, W // 2, 2).mean(axis=(3, 5))
    return h


if __name__ == "__main__":
    N, C_in, H, W = 2, 64, 16, 16
    C_out = 32

    key = jax.random.PRNGKey(0)
    keys = jax.random.split(key, 6)
    x = jax.random.normal(keys[0], (N, C_in, H, W), jnp.float32)

    g = 1.0 + 0.1 * jax.random.normal(keys[1], (C_in,), jnp.float32)
    b = 0.1 * jax.random.normal(keys[2], (C_in,), jnp.float32)
    m = 0.1 * jax.random.normal(keys[3], (C_in,), jnp.float32)
    v = jax.random.uniform(keys[4], (C_in,), jnp.float32, 0.5, 1.5)
    w = 0.1 * jax.random.normal(keys[5], (C_out, C_in, 1, 1), jnp.float32)
    params = (g, b, m, v, w)

    ref = jax.block_until_ready(ref_forward(x, params))

    # Default NCHW interface (matches the PyTorch module).  The auto tile
    # picker chooses tile_rows=8 here -> a 2-step pipelined "parallel" grid.
    out = jax.block_until_ready(transition_forward(x, params))
    assert out.shape == (N, C_out, H // 2, W // 2), out.shape
    err = float(jnp.max(jnp.abs(out - ref)))
    assert err < 2e-2, f"NCHW max abs error {err}"

    # Channels-last fast path (no wrapper transposes around the kernel).
    x_nhwc = jnp.transpose(x, (0, 2, 3, 1))
    out_nhwc = jax.block_until_ready(
        transition_forward(x_nhwc, params, data_format="NHWC"))
    err2 = float(jnp.max(jnp.abs(jnp.transpose(out_nhwc, (0, 3, 1, 2)) - ref)))
    assert err2 < 2e-2, f"NHWC max abs error {err2}"

    print("KERNEL_OK")
</pallas_src>

<mosaic_0001>
module attributes {stable_mosaic.version = 11 : i64} {
  func.func @_bn_relu_pool_conv1x1_kernel(%arg0: i32, %arg1: memref<16x8x128xf32, #tpu.memory_space<vmem>>, %arg2: memref<1x128xf32, #tpu.memory_space<vmem>>, %arg3: memref<1x128xf32, #tpu.memory_space<vmem>>, %arg4: memref<64x32xbf16, #tpu.memory_space<vmem>>, %arg5: memref<64x32xf32, #tpu.memory_space<vmem>>) attributes {dimension_semantics = [#tpu.dimension_semantics<parallel>], iteration_bounds = array<i64: 2>, scalar_prefetch = 0 : i64, scratch_operands = 0 : i64, tpu.core_type = #tpu.core_type<tc>, window_params = [{transform_indices = @transform_0, window_bounds = array<i64: 16, 8, 128>}, {pipeline_mode = #tpu.pipeline_mode<synchronous>, transform_indices = @transform_1, window_bounds = array<i64: 1, 128>}, {pipeline_mode = #tpu.pipeline_mode<synchronous>, transform_indices = @transform_2, window_bounds = array<i64: 1, 128>}, {pipeline_mode = #tpu.pipeline_mode<synchronous>, transform_indices = @transform_3, window_bounds = array<i64: 64, 32>}, {transform_indices = @transform_4, window_bounds = array<i64: 64, 32>}]} {
    %c0 = arith.constant 0 : index
    %c0_0 = arith.constant 0 : index
    %c0_1 = arith.constant 0 : index
    %0 = vector.load %arg1[%c0, %c0_0, %c0_1] : memref<16x8x128xf32, #tpu.memory_space<vmem>>, vector<16x8x128xf32>
    %c0_2 = arith.constant 0 : index
    %c0_3 = arith.constant 0 : index
    %1 = vector.load %arg2[%c0_2, %c0_3] : memref<1x128xf32, #tpu.memory_space<vmem>>, vector<1x128xf32>
    %2 = vector.shape_cast %1 : vector<1x128xf32> to vector<1x1x128xf32>
    %3 = vector.broadcast %2 : vector<1x1x128xf32> to vector<16x8x128xf32>
    %4 = arith.mulf %0, %3 : vector<16x8x128xf32>
    %c0_4 = arith.constant 0 : index
    %c0_5 = arith.constant 0 : index
    %5 = vector.load %arg3[%c0_4, %c0_5] : memref<1x128xf32, #tpu.memory_space<vmem>>, vector<1x128xf32>
    %6 = vector.shape_cast %5 : vector<1x128xf32> to vector<1x1x128xf32>
    %7 = vector.broadcast %6 : vector<1x1x128xf32> to vector<16x8x128xf32>
    %8 = arith.addf %4, %7 : vector<16x8x128xf32>
    %cst = arith.constant 0.000000e+00 : f32
    %9 = vector.broadcast %cst : f32 to vector<16x8x128xf32>
    %10 = arith.maximumf %8, %9 : vector<16x8x128xf32>
    %11 = vector.extract_strided_slice %10 {offsets = [0, 0, 0], sizes = [16, 8, 64], strides = [1, 1, 1]} : vector<16x8x128xf32> to vector<16x8x64xf32>
    %12 = vector.extract_strided_slice %10 {offsets = [0, 0, 64], sizes = [16, 8, 64], strides = [1, 1, 1]} : vector<16x8x128xf32> to vector<16x8x64xf32>
    %13 = arith.addf %11, %12 : vector<16x8x64xf32>
    %14 = vector.shape_cast %13 : vector<16x8x64xf32> to vector<8x2x8x64xf32>
    %15 = vector.extract_strided_slice %14 {offsets = [0, 0, 0, 0], sizes = [8, 1, 8, 64], strides = [1, 1, 1, 1]} : vector<8x2x8x64xf32> to vector<8x1x8x64xf32>
    %16 = vector.shape_cast %15 : vector<8x1x8x64xf32> to vector<8x8x64xf32>
    %17 = vector.extract_strided_slice %14 {offsets = [0, 1, 0, 0], sizes = [8, 1, 8, 64], strides = [1, 1, 1, 1]} : vector<8x2x8x64xf32> to vector<8x1x8x64xf32>
    %18 = vector.shape_cast %17 : vector<8x1x8x64xf32> to vector<8x8x64xf32>
    %19 = arith.addf %16, %18 : vector<8x8x64xf32>
    %20 = vector.shape_cast %19 : vector<8x8x64xf32> to vector<64x64xf32>
    %21 = arith.truncf %20 : vector<64x64xf32> to vector<64x64xbf16>
    %c0_6 = arith.constant 0 : index
    %c0_7 = arith.constant 0 : index
    %22 = vector.load %arg4[%c0_6, %c0_7] : memref<64x32xbf16, #tpu.memory_space<vmem>>, vector<64x32xbf16>
    %cst_8 = arith.constant dense<0.000000e+00> : vector<64x32xf32>
    %23 = tpu.matmul %21, %22, %cst_8 {dimension_numbers = #tpu.dot_dimension_numbers<[1], [0], [0], [1], [0, 0, 1, 1], [], []>} : vector<64x64xbf16>, vector<64x32xbf16>, vector<64x32xf32> -> vector<64x32xf32>
    %c0_9 = arith.constant 0 : index
    %c0_10 = arith.constant 0 : index
    %24 = vector.load %arg5[%c0_9, %c0_10] : memref<64x32xf32, #tpu.memory_space<vmem>>, vector<64x32xf32>
    tpu.vector_store %arg5[%c0_9, %c0_10], %23 {strides = array<i32>} : memref<64x32xf32, #tpu.memory_space<vmem>>, vector<64x32xf32>,
    return
  }
  func.func @transform_0(%arg0: i32) -> (i32, i32, i32) {
    %c0_i32 = arith.constant 0 : i32
    %c0_i32_0 = arith.constant 0 : i32
    %c0_i32_1 = arith.constant 0 : i32
    return %arg0, %c0_i32, %c0_i32_0 : i32, i32, i32
  }
  func.func @transform_1(%arg0: i32) -> (i32, i32) {
    %c0_i32 = arith.constant 0 : i32
    %c0_i32_0 = arith.constant 0 : i32
    %c0_i32_1 = arith.constant 0 : i32
    return %c0_i32, %c0_i32_0 : i32, i32
  }
  func.func @transform_2(%arg0: i32) -> (i32, i32) {
    %c0_i32 = arith.constant 0 : i32
    %c0_i32_0 = arith.constant 0 : i32
    %c0_i32_1 = arith.constant 0 : i32
    return %c0_i32, %c0_i32_0 : i32, i32
  }
  func.func @transform_3(%arg0: i32) -> (i32, i32) {
    %c0_i32 = arith.constant 0 : i32
    %c0_i32_0 = arith.constant 0 : i32
    %c0_i32_1 = arith.constant 0 : i32
    return %c0_i32, %c0_i32_0 : i32, i32
  }
  func.func @transform_4(%arg0: i32) -> (i32, i32) {
    %c0_i32 = arith.constant 0 : i32
    %c0_i32_0 = arith.constant 0 : i32
    return %arg0, %c0_i32 : i32, i32
  }
}

</mosaic_0001>

<bundles_post_ra>
// kernel: tpu_custom_call.1
= control target key start
LH: loop header
LB: loop body
LE: loop exit
PB: predicated region body
PF: predicated region fallthrough
CT: control target
= control target key end

     0   :  { %9 = vsyncpa [#allocation3], 0  ;;  %s1020_s0 = inlined_call_operand.hbm [shape: f32[32,8,128], index: 0, kind: input, shape index: {}]   ;;  %s1021_s1 = inlined_call_operand.vmem [shape: f32[1,128], index: 1, kind: input, shape index: {}]   ;;  %s1022_s2 = inlined_call_operand.vmem [shape: f32[1,128], index: 2, kind: input, shape index: {}]   ;;  %s1023_s3 = inlined_call_operand.vmem [shape: bf16[64,32], index: 3, kind: input, shape index: {}]   ;;  %s1024_s4 = inlined_call_operand.vmem [shape: f32[128,32], index: 4, kind: output, shape index: {}]  }
   0x1   :  { %11 = vsyncpa [#allocation3 + $0x1], 0  ;;  %s725_s15 = smov 0   ;;  %s727_s16 = smov 0  }
   0x2   :  { %s729_s17 = smov 0   ;;  %s731_s18 = smov 0  }
   0x3 LB: > { %s537_s19 = sadd.s32 4294967295, %s695_s18   ;;  %s745_s20 = sadd.s32 1, %s695_s18   ;;  %s695_s18 = sphi %s731_s18, %s1031_s18   ;;  %s691_s17 = sphi %s729_s17, %s1030_s17   ;;  %s687_s16 = sphi %s727_s16, %s1029_s16   ;;  %s683_s15 = sphi %s725_s15, %s1028_s15  }
   0x4   : > { %s21_s21 = ssub.s32 %s695_s18, %s745_s20  ;;  %s24_s22 = sadd.s32 1, %s691_s17 }
   0x5   : > { %p22_p0 = scmp.eq.s32.totalorder %s21_s21, 0  ;;  %p31_p1 = scmp.ne.s32.totalorder %s691_s17, %s687_s16 }
   0x6   : > { %p32_p2 = scmp.eq.s32.totalorder %s695_s18, 0  ;;  %p37_p3 = scmp.ne.s32.totalorder %s687_s16, %s683_s15 }
   0x7   : > { %s755_s23 = scalar_select %p22_p0, %s691_s17, %s24_s22  }
   0x8   : > { %p757_p4 = por %p32_p2, %p31_p1  ;;  %p38_p5 = scmp.eq.s32.totalorder %s537_s19, 0 }
   0x9   : > { %p593_p6 = scmp.lt.s32.totalorder %s695_s18, 2  ;;  %s159_s26 = sand.u32 1, %s691_s17  }
   0xa   : > { %p764_p7 = por %p38_p5, %p37_p3  ;;  %s541_s27 = sshll.u32 %s159_s26, 7 }
   0xb   : > { %s570_s28 = sshll.u32 %s695_s18, 7  ;;  %s163_s6 = scalar_lea.vmem [#allocation2], %s541_s27 }
   0xc   : > { %s168_s5 = scalar_lea.hbm %s1020_s0, %s570_s28  ;;  %s171_s7 = sshll.u32 %s163_s6, 4  ;;  %s172_s7 = int_to_ptr.vmem [resolvable:$true] %s171_s7 }
   0xd   : > { %s169_s8 = sshll.u32 %s168_s5, 4  ;;  %p775_p8 = pnand %p593_p6, %p757_p4  ;;  %s170_s8 = int_to_ptr.hbm [resolvable:$true] %s169_s8 }
   0xe   : > { %p544_p9 = scmp.ge.s32.totalorder %s695_s18, 1  ;;  %s160_s10 = scalar_lea.sflag [#allocation3], %s159_s26 }
   0xf   : > { %s631_s11 = sshra.s32 %s170_s8, 4  ;;  %p635_p11 = pneg %p775_p8  ;;  %s632_s11 = int_to_ptr.hbm [resolvable:$true] %s631_s11 }
  0x10   : > { %s633_s12 = scalar_lea.hbm %s632_s11, 128  ;;  %s638_s15 = scalar_lea.hbm %s1020_s0, 256 }
  0x11   : > { %p634_p10 = scmp.ne.s32.totalorder %s632_s11, %s633_s12  ;;  %p639_p0 = scmp.lt.s32.totalorder %s632_s11, %s1020_s0 }
  0x12   : > { %p640_p1 = scmp.lt.s32.totalorder %s638_s15, %s633_s12 }
  0x13   : > { %p636_p12 = pnand %p635_p11, %p634_p10 }
  0x14   : > { %p641_p2 = por %p640_p1, %p639_p0 }
  0x15   : > { %p637_p13 = pneg %p636_p12 }
  0x17   : > { %p642_p3 = pnand %p641_p2, %p637_p13 }
  0x19   : > { %645 = shalt.err (!%p642_p3)
}
  0x1a   : > { %s697_s24 = smov 128   ;;  %s698_s26 = smov 8  }
  0x1b   : > { %592 = dma.hbm_to_vmem [thread:$0]  (!%p775_p8), %s170_s8, 2048, %s172_s7, %s160_s10, %s697_s24, %s697_s24, %s698_s26  }
  0x1c   : > { %p179_p4 = scmp.lt.s32.totalorder %s695_s18, 3 }
  0x1e   : > { %p180_p5 = pnand %p544_p9, %p179_p4 }
  0x1f   : > { %s185_s27 = sand.u32 (!%p180_p5), 1, %s687_s16  }
  0x20   : > { %183 = sbr.rel (%p180_p5) target bundleno = 343 (0x157), region = 36  ;;  %s545_s28 = sshll.u32 (!%p180_p5), %s185_s27, 7 }
  0x21   : > { %s186_s29 = scalar_lea.sflag (!%p180_p5), [#allocation3], %s185_s27  ;;  %s794_s30 = scalar_lea.vmem (!%p180_p5), [#allocation2], %s545_s28 }
  0x25   : > { %678 = dma.done.wait (%p764_p7), %s186_s29, 2048  }
  0x26   : > { %680 = vsyncadd (%p764_p7), %s186_s29, 4294965248  ;;  %v233_v0 = vld [vmem:[%s794_s30 + $0x50] sm:$0xff]  ;;  %v804_v1 = vld [vmem:[%s1021_s1] ss:$0 sm:$0xff]  ;;  %s699_s25 = smov 64   ;;  %vm419_vm0 = vcmask 523264  }
  0x27   : > { %v809_v2 = vld [vmem:[%s1022_s2] ss:$0 sm:$0xff]  ;;  %v253_v4 = vmul.f32 %v804_v1, %v233_v0  ;;  %v234_v6 = vld [vmem:[%s794_s30 + $0x58] sm:$0xff]  ;;  %v232_v7 = vld [vmem:[%s794_s30 + $0x48] sm:$0xff]  ;;  %s546_s22 = sshll.u32 %s537_s19, 3  ;;  %vm461_vm1 = vcmask 261120  }
  0x28   : > { %v231_v3 = vld [vmem:[%s794_s30 + $0x40] sm:$0xff]  ;;  %v254_v8 = vmul.f32 %v804_v1, %v234_v6  ;;  %v252_v12 = vmul.f32 %v804_v1, %v232_v7  ;;  %v236_v14 = vld [vmem:[%s794_s30 + $0x68] sm:$0xff]  ;;  %v238_v22 = vld [vmem:[%s794_s30 + $0x78] sm:$0xff]  ;;  %p217_p6 = scmp.lt.s32.totalorder %s546_s22, 15 }
  0x29   : > { %v251_v5 = vmul.f32 %v804_v1, %v231_v3  ;;  %v235_v9 = vld [vmem:[%s794_s30 + $0x60] sm:$0xff]  ;;  %v819_v10 = vadd.f32 %v809_v2, %v253_v4  ;;  %v256_v21 = vmul.f32 %v804_v1, %v236_v14  ;;  %v237_v23 = vld [vmem:[%s794_s30 + $0x70] sm:$0xff]  ;;  %v258_v28 = vmul.f32 %v804_v1, %v238_v22  ;;  %v224_v35 = vld [vmem:[%s794_s30 + $0x8] sm:$0xff] }
  0x2a   : > { %v255_v13 = vmul.f32 %v804_v1, %v235_v9  ;;  %v839_v18 = vadd.f32 %v809_v2, %v254_v8  ;;  %v842_v19 = vadd.f32 %v809_v2, %v252_v12  ;;  %v223_v25 = vld [vmem:[%s794_s30] sm:$0xff]  ;;  %v257_v29 = vmul.f32 %v804_v1, %v237_v23  ;;  %v225_v34 = vld [vmem:[%s794_s30 + $0x10] sm:$0xff]  ;;  %v574_v36 = vld [vmem:[%s1023_s3 + $0x18] sm:$0xff]  ;;  %s1033_s22 = smov (!%p217_p6, %s546_s22), 15 }
  0x2b   : > { %v822_v11 = vadd.f32 %v809_v2, %v251_v5  ;;  %v289_v15 = vmax.f32 %v819_v10, 0.0  ;;  %v852_v24 = vadd.f32 %v809_v2, %v256_v21  ;;  %v243_v31 = vmul.f32 %v804_v1, %v223_v25  ;;  %v226_v38 = vld [vmem:[%s794_s30 + $0x18] sm:$0xff]  ;;  %576 = vmatpush.bf16.msra.mxu2 %v574_v36  ;;  %577 = vmatpush.bf16.msra.mxu3 %v574_v36  ;;  %v228_v47 = vld [vmem:[%s794_s30 + $0x28] sm:$0xff]  ;;  %v227_v48 = vld [vmem:[%s794_s30 + $0x20] sm:$0xff]  ;;  %s547_s24 = sshll.u32 %s1033_s22, 3 }
  0x2c   : > { %v830_v17 = vadd.f32 %v809_v2, %v255_v13  ;;  %v290_v26 = vmax.f32 %v839_v18, 0.0  ;;  %v288_v27 = vmax.f32 %v842_v19, 0.0  ;;  %v868_v32 = vadd.f32 %v809_v2, %v258_v28  ;;  %436 = vmatpush.bf16.msra.mxu0 %v574_v36  ;;  %575 = vmatpush.bf16.msra.mxu1 %v574_v36  ;;  %v229_v50 = vld [vmem:[%s794_s30 + $0x30] sm:$0xff]  ;;  %v230_v59 = vld [vmem:[%s794_s30 + $0x38] sm:$0xff]  ;;  %v572_v5 = vld [vmem:[%s1023_s3 + $0x8] sm:$0xff]  ;;  %s220_s28 = scalar_lea.vmem %s1024_s4, %s547_s24 }
  0x2d   : > { %v287_v16 = vmax.f32 %v822_v11, 0.0  ;;  %331 = vrot.lane.b32.xlu1 %v289_v15, %s699_s25  ;;  %v292_v30 = vmax.f32 %v852_v24, 0.0  ;;  %v871_v33 = vadd.f32 %v809_v2, %v257_v29  ;;  %v882_v37 = vadd.f32 %v809_v2, %v243_v31 }
  0x2e   : > { %v291_v20 = vmax.f32 %v830_v17, 0.0  ;;  %v294_v39 = vmax.f32 %v868_v32, 0.0  ;;  %v245_v41 = vmul.f32 %v804_v1, %v225_v34  ;;  %v244_v42 = vmul.f32 %v804_v1, %v224_v35 }
  0x2f   : > { %327 = vrot.lane.b32.xlu0 %v287_v16, %s699_s25  ;;  %v293_v40 = vmax.f32 %v871_v33, 0.0  ;;  %v279_v43 = vmax.f32 %v882_v37, 0.0  ;;  %v246_v44 = vmul.f32 %v804_v1, %v226_v38  ;;  %v248_v53 = vmul.f32 %v804_v1, %v228_v47 }
  0x30   : > { %335 = vrot.lane.b32.xlu2 %v291_v20, %s699_s25  ;;  %v898_v45 = vadd.f32 %v809_v2, %v245_v41  ;;  %v901_v46 = vadd.f32 %v809_v2, %v244_v42  ;;  %v247_v54 = vmul.f32 %v804_v1, %v227_v48  ;;  %v249_v56 = vmul.f32 %v804_v1, %v229_v50 }
  0x31   : > { %v909_v49 = vadd.f32 %v809_v2, %v246_v44  ;;  %v925_v57 = vadd.f32 %v809_v2, %v248_v53  ;;  %v250_v63 = vmul.f32 %v804_v1, %v230_v59  ;;  %v573_v1 = vld [vmem:[%s1023_s3 + $0x10] sm:$0xff] }
  0x32   : > { %v281_v51 = vmax.f32 %v898_v45, 0.0  ;;  %v280_v52 = vmax.f32 %v901_v46, 0.0  ;;  %v928_v58 = vadd.f32 %v809_v2, %v247_v54  ;;  %v933_v60 = vadd.f32 %v809_v2, %v249_v56  ;;  %579 = vmatpush.bf16.msra.mxu2 %v573_v1  ;;  %580 = vmatpush.bf16.msra.mxu3 %v573_v1 }
  0x33   : > { %v282_v55 = vmax.f32 %v909_v49, 0.0  ;;  %v284_v61 = vmax.f32 %v925_v57, 0.0  ;;  %v946_v3 = vadd.f32 %v809_v2, %v250_v63  ;;  %437 = vmatpush.bf16.msra.mxu0 %v573_v1  ;;  %578 = vmatpush.bf16.msra.mxu1 %v573_v1  ;;  %v571_v2 = vld [vmem:[%s1023_s3] sm:$0xff] }
  0x34   : > { %v283_v62 = vmax.f32 %v928_v58, 0.0  ;;  %v285_v0 = vmax.f32 %v933_v60, 0.0 }
  0x35   : > { %333 = vrot.lane.b32.xlu1 %v290_v26, %s699_s25  ;;  %v286_v4 = vmax.f32 %v946_v3, 0.0 }
  0x36   : > { %582 = vmatpush.bf16.msra.mxu2 %v572_v5  ;;  %583 = vmatpush.bf16.msra.mxu3 %v572_v5 }
  0x37   : > { %329 = vrot.lane.b32.xlu0 %v288_v27, %s699_s25  ;;  %438 = vmatpush.bf16.msra.mxu0 %v572_v5 }
  0x38   : > { %337 = vrot.lane.b32.xlu2 %v292_v30, %s699_s25  ;;  %581 = vmatpush.bf16.msra.mxu1 %v572_v5 }
  0x3a   : > { %585 = vmatpush.bf16.msra.mxu2 %v571_v2  ;;  %586 = vmatpush.bf16.msra.mxu3 %v571_v2 }
  0x3b   : > { %439 = vmatpush.bf16.msra.mxu0 %v571_v2 }
  0x3c   : > { %584 = vmatpush.bf16.msra.mxu1 %v571_v2 }
  0x3d   : > { %341 = vrot.lane.b32.xlu1 %v294_v39, %s699_s25 }
  0x3f   : > { %339 = vrot.lane.b32.xlu0 %v293_v40, %s699_s25 }
  0x40   : > { %311 = vrot.lane.b32.xlu2 %v279_v43, %s699_s25 }
  0x45   : > { %315 = vrot.lane.b32.xlu1 %v281_v51, %s699_s25 }
  0x47   : > { %313 = vrot.lane.b32.xlu0 %v280_v52, %s699_s25 }
  0x48   : > { %317 = vrot.lane.b32.xlu2 %v282_v55, %s699_s25 }
  0x4d   : > { %321 = vrot.lane.b32.xlu1 %v284_v61, %s699_s25 }
  0x4f   : > { %319 = vrot.lane.b32.xlu0 %v283_v62, %s699_s25 }
  0x50   : > { %323 = vrot.lane.b32.xlu2 %v285_v0, %s699_s25 }
  0x57   : > { %325 = vrot.lane.b32.xlu0 %v286_v4, %s699_s25 }
  0x8a   : > { %v336_v6 = vpop.permute.xlu2 %335 }
  0x8b   : > { %v371_v10 = vadd.f32 %v336_v6, %v291_v20 }
  0x92   : > { %v338_v7 = vpop.permute.xlu2 %337 }
  0x9a   : > { %v312_v25 = vpop.permute.xlu2 %311 }
  0x9b   : > { %v359_v17 = vadd.f32 %v312_v25, %v279_v43 }
  0x9f   : > { %v332_v8 = vpop.permute.xlu1 %331 }
  0xa0   : > { %v369_v12 = vadd.f32 %v332_v8, %v289_v15  ;;  %v372_v15 = vadd.f32 %v338_v7, %v292_v30 }
  0xa1   : > { %v328_v9 = vpop.permute.xlu0 %327 }
  0xa2   : > { %v367_v21 = vadd.f32 %v328_v9, %v287_v16  ;;  %v318_v34 = vpop.permute.xlu2 %317 }
  0xa3   : > { %v362_v20 = vadd.f32 %v318_v34, %v282_v55 }
  0xa7   : > { %v334_v13 = vpop.permute.xlu1 %333 }
  0xa8   : > { %v370_v22 = vadd.f32 %v334_v13, %v290_v26  ;;  %v381_v26 = vadd.f32 %v372_v15, %v371_v10 }
  0xa9   : > { %v330_v14 = vpop.permute.xlu0 %329 }
  0xaa   : > { %v368_v23 = vadd.f32 %v330_v14, %v288_v27  ;;  %v380_v28 = vadd.f32 %v370_v22, %v369_v12  ;;  %v324_v41 = vpop.permute.xlu2 %323 }
  0xab   : > { %v365_v44 = vadd.f32 %v324_v41, %v285_v0 }
  0xac   : > { %v379_v29 = vadd.f32 %v368_v23, %v367_v21 }
  0xae   : > { %v385_v31 = vpack.c.bf16 %v380_v28, %v379_v29 }
  0xaf   : > { %v342_v11 = vpop.permute.xlu1 %341 }
  0xb0   : > { %566 = vmatmul.msk.bf16.vlgmr.msra.gmra.mxu2 %vm419_vm0, %v385_v31  ;;  %v374_v18 = vadd.f32 %v342_v11, %v294_v39 }
  0xb1   : > { %v340_v16 = vpop.permute.xlu0 %339 }
  0xb2   : > { %v373_v19 = vadd.f32 %v340_v16, %v293_v40 }
  0xb4   : > { %v382_v27 = vadd.f32 %v374_v18, %v373_v19 }
  0xb6   : > { %v386_v35 = vpack.c.bf16 %v382_v27, %v381_v26 }
  0xb7   : > { %v316_v24 = vpop.permute.xlu1 %315 }
  0xb8   : > { %567 = vmatmul.msk.bf16.vlgmr.msra.gmra.mxu3 %vm419_vm0, %v386_v35  ;;  %v361_v36 = vadd.f32 %v316_v24, %v281_v51 }
  0xb9   : > { %v314_v30 = vpop.permute.xlu0 %313 }
  0xba   : > { %v360_v32 = vadd.f32 %v314_v30, %v280_v52  ;;  %v376_v38 = vadd.f32 %v362_v20, %v361_v36 }
  0xbc   : > { %v375_v33 = vadd.f32 %v360_v32, %v359_v17 }
  0xbe   : > { %v383_v39 = vpack.c.bf16 %v376_v38, %v375_v33 }
  0xbf   : > { %v322_v37 = vpop.permute.xlu1 %321 }
  0xc0   : > { %564 = vmatmul.msk.bf16.vlgmr.msra.gmra.mxu0 %vm419_vm0, %v383_v39  ;;  %v364_v42 = vadd.f32 %v322_v37, %v284_v61 }
  0xc1   : > { %v320_v40 = vpop.permute.xlu0 %319 }
  0xc2   : > { %v363_v43 = vadd.f32 %v320_v40, %v283_v62 }
  0xc4   : > { %v377_v47 = vadd.f32 %v364_v42, %v363_v43 }
  0xc9   : > { %v326_v45 = vpop.permute.xlu0 %325 }
  0xca   : > { %v366_v46 = vadd.f32 %v326_v45, %v286_v4 }
  0xcc   : > { %v378_v48 = vadd.f32 %v366_v46, %v365_v44 }
  0xce   : > { %v384_v49 = vpack.c.bf16 %v378_v48, %v377_v47 }
  0xd0   : > { %565 = vmatmul.msk.bf16.vlgmr.msra.gmra.mxu1 %vm419_vm0, %v384_v49 }
 0x133   : > { %v451_v50 = vpop.f32.mrf.mxu2 }
 0x134   : > { %466 = vst.msk [vmem:[%s220_s28 + $0x20] sm:$0xff] %vm461_vm1, %v451_v50 }
 0x13b   : > { %v453_v51 = vpop.f32.mrf.mxu2  ;;  %v456_v52 = vpop.f32.mrf.mxu3 }
 0x13c   : > { %467 = vst.msk [vmem:[%s220_s28 + $0x28] sm:$0xff] %vm461_vm1, %v453_v51 }
 0x13d   : > { %468 = vst.msk [vmem:[%s220_s28 + $0x30] sm:$0xff] %vm461_vm1, %v456_v52  ;;  %v441_v53 = vpop.f32.mrf.mxu0 }
 0x13e   : > { %462 = vst.msk [vmem:[%s220_s28] sm:$0xff] %vm461_vm1, %v441_v53 }
 0x143   : > { %v458_v54 = vpop.f32.mrf.mxu3 }
 0x144   : > { %469 = vst.msk [vmem:[%s220_s28 + $0x38] sm:$0xff] %vm461_vm1, %v458_v54 }
 0x145   : > { %v443_v55 = vpop.f32.mrf.mxu0 }
 0x146   : > { %463 = vst.msk [vmem:[%s220_s28 + $0x8] sm:$0xff] %vm461_vm1, %v443_v55 }
 0x14d   : > { %v446_v56 = vpop.f32.mrf.mxu1 }
 0x14e   : > { %464 = vst.msk [vmem:[%s220_s28 + $0x10] sm:$0xff] %vm461_vm1, %v446_v56 }
 0x155   : > { %v448_v57 = vpop.f32.mrf.mxu1 }
 0x156   : > { %465 = vst.msk [vmem:[%s220_s28 + $0x18] sm:$0xff] %vm461_vm1, %v448_v57 }
 0x157 PF: > { %p14_p7 = scmp.ge.s32.totalorder %s745_s20, 4   ;;  %s1028_s15 = smov %s687_s16 }
 0x158   : > { %s1029_s16 = smov %s691_s17  ;;  %s1030_s17 = smov %s755_s23 }
 0x159   : > { %s1031_s18 = smov %s745_s20  ;;  %16 = sbr.rel (!%p14_p7) target bundleno = 3 (0x3), region = 76 }
 0x15e   :  { %492 = vsyncpa [#allocation3], 1 }
 0x15f   :  { %494 = vsyncpa [#allocation3 + $0x1], 1 }

</bundles_post_ra>
